<compile_context>
chip_gen: v6e
topology: v6e:2x2x1
jax: 0.10.0
libtpu: 0.0.40
codegen_flags: <defaults>
</compile_context>

<pallas_src>
import jax
import jax.numpy as jnp
from jax.experimental import pallas as pl
from jax.experimental.pallas import tpu as pltpu


def _round_up(v, m):
    return ((v + m - 1) // m) * m


# ---------------------------------------------------------------------------
# Kernels
# ---------------------------------------------------------------------------
def _mlp_kernel_single(x_ref, w1_ref, b1_ref, w2_ref, b2_ref, o_ref):
    """Single-K-step fast path: W1 fully resident, no accumulator scratch.

    x_ref : (TM, K)          compute dtype (streamed per batch tile)
    w1_ref: (K, hidden)      compute dtype (pre-transposed -> natural contraction)
    b1_ref: (1, hidden)      f32
    w2_ref: (hidden, NC_pad) compute dtype (pre-transposed)
    b2_ref: (1, NC_pad)      f32
    o_ref : (TM, NC_pad)     output dtype (lane-dense stores)
    """
    h = jnp.dot(x_ref[...], w1_ref[...], preferred_element_type=jnp.float32)
    h = jnp.maximum(h + b1_ref[...], 0.0)          # f32 bias + ReLU on the VPU
    out = jnp.dot(h.astype(w2_ref.dtype), w2_ref[...],
                  preferred_element_type=jnp.float32)
    o_ref[...] = (out + b2_ref[...]).astype(o_ref.dtype)


def _mlp_kernel_ktiled(x_ref, w1_ref, b1_ref, w2_ref, b2_ref, o_ref, acc_ref):
    """K-tiled path: accumulate x @ W1 over the K grid axis into an f32 scratch.

    The accumulator is initialized with b1 at k==0 (saves the epilogue bias
    add); at the last K step the fused ReLU + second matmul + bias runs and the
    lane-dense output tile is stored.
    """
    k = pl.program_id(1)

    @pl.when(k == 0)
    def _():
        acc_ref[...] = jnp.broadcast_to(b1_ref[...], acc_ref.shape)

    acc_ref[...] += jnp.dot(x_ref[...], w1_ref[...],
                            preferred_element_type=jnp.float32)

    @pl.when(k == pl.num_programs(1) - 1)
    def _():
        h = jnp.maximum(acc_ref[...], 0.0)
        out = jnp.dot(h.astype(w2_ref.dtype), w2_ref[...],
                      preferred_element_type=jnp.float32)
        o_ref[...] = (out + b2_ref[...]).astype(o_ref.dtype)


# ---------------------------------------------------------------------------
# Wrapper
# ---------------------------------------------------------------------------
def neural_network_forward(x, w1, b1, w2, b2, *, tm=None, tk=None,
                           compute_dtype=jnp.bfloat16,
                           vmem_limit_bytes=48 * 1024 * 1024):
    """Forward pass equivalent to the PyTorch module.

    x : (B, input_dim)
    w1: (hidden, input_dim)    b1: (hidden,)       (PyTorch nn.Linear layout)
    w2: (num_classes, hidden)  b2: (num_classes,)
    returns (B, num_classes) logits in x.dtype

    compute_dtype: MXU input dtype (bf16 default; accumulation/bias/ReLU are
                   always f32).  Pass jnp.float32 for a tight numerical path.
    """
    B, K = x.shape
    hidden = w1.shape[0]
    num_classes = w2.shape[0]
    out_dtype = x.dtype

    bc = jnp.dtype(compute_dtype).itemsize
    bo = jnp.dtype(out_dtype).itemsize

    NC_pad = _round_up(max(num_classes, 1), 128)      # lane-dense output slab

    # ---- Adaptive batch tile ----------------------------------------------
    B8 = _round_up(B, 8)
    if tm is None:
        if B8 <= 128:
            TM = B8                                    # small batch: no padded MXU work
        elif B8 <= 512:
            TM = _round_up(pl.cdiv(B8, 2), 8)          # 2 tiles -> both v7x TCs busy
        else:
            TM = 256                                   # large batch: big streaming tiles
    else:
        TM = _round_up(min(tm, B8), 8)
    B_pad = _round_up(B, TM)

    # ---- K tiling: resident-W1 single step when the working set fits VMEM --
    def footprint(tk_, k_steps):
        # Conservative: assume default double-buffering of every input.
        f = 2 * TM * tk_ * bc              # streamed x tiles
        f += 2 * tk_ * hidden * bc         # W1 tile(s)
        f += 2 * hidden * NC_pad * bc      # resident W2
        f += 2 * TM * NC_pad * bo          # output tiles
        if k_steps > 1:
            f += TM * hidden * 4           # f32 accumulator scratch
        return f

    WORKSET_BUDGET = 36 * 1024 * 1024      # leaves headroom under v7x's 64 MiB VMEM

    if tk is not None:                     # caller-forced K tile -> K-tiled path
        single_k = False
        tk = min(_round_up(tk, 128), _round_up(K, 128))
        K_pad = _round_up(K, tk)
    elif footprint(K, 1) <= WORKSET_BUDGET:
        single_k = True
        tk = K
        K_pad = K                          # full-extent block: no K padding needed
    else:
        single_k = False
        tk = 128
        for cand in (1024, 512, 256):      # biggest lane-aligned tile that fits
            if (cand < _round_up(K, 128)
                    and footprint(cand, 2) <= WORKSET_BUDGET
                    and (_round_up(K, cand) - K) <= cand // 4):
                tk = cand
                break
        K_pad = _round_up(K, tk)

    # ---- One-time weight layout transforms (amortized over all batch tiles) -
    w1t = w1.T                                           # (K, hidden)
    if K_pad != K:
        # Zero K-pad of BOTH x and W1 keeps the reduction exact.
        w1t = jnp.pad(w1t, ((0, K_pad - K), (0, 0)))
    w1t = w1t.astype(compute_dtype)

    w2t = w2.T                                           # (hidden, num_classes)
    if NC_pad != num_classes:
        w2t = jnp.pad(w2t, ((0, 0), (0, NC_pad - num_classes)))
    w2t = w2t.astype(compute_dtype)

    b1p = b1.astype(jnp.float32).reshape(1, hidden)
    b2p = b2.astype(jnp.float32)
    if NC_pad != num_classes:
        b2p = jnp.pad(b2p, (0, NC_pad - num_classes))
    b2p = b2p.reshape(1, NC_pad)

    # ---- Activations: pad only when the tiling actually requires it ---------
    if (B_pad != B) or (K_pad != K):
        xp = jnp.pad(x, ((0, B_pad - B), (0, K_pad - K)))
    else:
        xp = x
    xp = xp.astype(compute_dtype)

    # ---- pallas_call ---------------------------------------------------------
    if single_k:
        grid_spec = pltpu.PrefetchScalarGridSpec(
            num_scalar_prefetch=0,
            grid=(B_pad // TM,),
            in_specs=[
                pl.BlockSpec((TM, K_pad), lambda i: (i, 0)),         # x (streamed)
                pl.BlockSpec((K_pad, hidden), lambda i: (0, 0)),     # W1 (resident)
                pl.BlockSpec((1, hidden), lambda i: (0, 0)),         # b1
                pl.BlockSpec((hidden, NC_pad), lambda i: (0, 0)),    # W2 (resident)
                pl.BlockSpec((1, NC_pad), lambda i: (0, 0)),         # b2
            ],
            out_specs=pl.BlockSpec((TM, NC_pad), lambda i: (i, 0)),
        )
        kernel = _mlp_kernel_single
        dim_sem = ("parallel",)
    else:
        grid_spec = pltpu.PrefetchScalarGridSpec(
            num_scalar_prefetch=0,
            grid=(B_pad // TM, K_pad // tk),
            in_specs=[
                pl.BlockSpec((TM, tk), lambda i, k: (i, k)),         # x tile
                pl.BlockSpec((tk, hidden), lambda i, k: (k, 0)),     # W1 K-tile
                pl.BlockSpec((1, hidden), lambda i, k: (0, 0)),      # b1
                pl.BlockSpec((hidden, NC_pad), lambda i, k: (0, 0)), # W2 (resident)
                pl.BlockSpec((1, NC_pad), lambda i, k: (0, 0)),      # b2
            ],
            out_specs=pl.BlockSpec((TM, NC_pad), lambda i, k: (i, 0)),
            scratch_shapes=[pltpu.VMEM((TM, hidden), jnp.float32)],  # layer-1 acc
        )
        kernel = _mlp_kernel_ktiled
        dim_sem = ("parallel", "arbitrary")

    out_padded = pl.pallas_call(
        kernel,
        out_shape=jax.ShapeDtypeStruct((B_pad, NC_pad), out_dtype),
        grid_spec=grid_spec,
        compiler_params=pltpu.CompilerParams(
            dimension_semantics=dim_sem,
            vmem_limit_bytes=vmem_limit_bytes,
        ),
    )(xp, w1t, b1p, w2t, b2p)

    return out_padded[:B, :num_classes]


def init_params(key, input_dim, hidden_nodes, num_classes):
    """Deterministic init mimicking PyTorch nn.Linear default U(+/- 1/sqrt(fan_in))."""
    k1, k2, k3, k4 = jax.random.split(key, 4)
    lim1 = 1.0 / jnp.sqrt(input_dim)
    lim2 = 1.0 / jnp.sqrt(hidden_nodes)
    w1 = jax.random.uniform(k1, (hidden_nodes, input_dim), jnp.float32, -lim1, lim1)
    b1 = jax.random.uniform(k2, (hidden_nodes,), jnp.float32, -lim1, lim1)
    w2 = jax.random.uniform(k3, (num_classes, hidden_nodes), jnp.float32, -lim2, lim2)
    b2 = jax.random.uniform(k4, (num_classes,), jnp.float32, -lim2, lim2)
    return w1, b1, w2, b2


if __name__ == "__main__":
    # Shapes consistent with the module: batch=8, input_dim=16, hidden=32, classes=4
    batch, input_dim, hidden_nodes, num_classes = 8, 16, 32, 4

    key = jax.random.PRNGKey(0)
    kx, kp, kx2, kp2 = jax.random.split(key, 4)
    x = jax.random.normal(kx, (batch, input_dim), jnp.float32)
    w1, b1, w2, b2 = init_params(kp, input_dim, hidden_nodes, num_classes)

    ref = jnp.maximum(x @ w1.T + b1, 0.0) @ w2.T + b2

    # Default fast path: bf16 MXU compute, f32 accumulation, resident W1.
    out = neural_network_forward(x, w1, b1, w2, b2)
    jax.block_until_ready(out)
    assert out.shape == (batch, num_classes)
    assert jnp.allclose(out, ref, atol=3e-2, rtol=3e-2)

    # Full-f32 path: tight numerical check against the plain-JAX reference.
    out_f32 = neural_network_forward(x, w1, b1, w2, b2, compute_dtype=jnp.float32)
    jax.block_until_ready(out_f32)
    assert jnp.allclose(out_f32, ref, atol=1e-4, rtol=1e-5)

    # Exercise the K-tiled accumulator path (forced tk) on a slightly larger layer.
    x2 = jax.random.normal(kx2, (64, 256), jnp.float32)
    w1b, b1b, w2b, b2b = init_params(kp2, 256, 64, 10)
    ref2 = jnp.maximum(x2 @ w1b.T + b1b, 0.0) @ w2b.T + b2b
    out2 = neural_network_forward(x2, w1b, b1b, w2b, b2b, tk=128)
    jax.block_until_ready(out2)
    assert out2.shape == (64, 10)
    assert jnp.allclose(out2, ref2, atol=6e-2, rtol=6e-2)

    print("KERNEL_OK")
</pallas_src>

<mosaic_0001>
module attributes {stable_mosaic.version = 11 : i64} {
  func.func @_mlp_kernel_single(%arg0: i32, %arg1: memref<8x16xbf16, #tpu.memory_space<vmem>>, %arg2: memref<16x32xbf16, #tpu.memory_space<vmem>>, %arg3: memref<1x32xf32, #tpu.memory_space<vmem>>, %arg4: memref<32x128xbf16, #tpu.memory_space<vmem>>, %arg5: memref<1x128xf32, #tpu.memory_space<vmem>>, %arg6: memref<8x128xf32, #tpu.memory_space<vmem>>) attributes {dimension_semantics = [#tpu.dimension_semantics<parallel>], iteration_bounds = array<i64: 1>, scalar_prefetch = 0 : i64, scratch_operands = 0 : i64, tpu.core_type = #tpu.core_type<tc>, window_params = [{transform_indices = @transform_0, window_bounds = array<i64: 8, 16>}, {pipeline_mode = #tpu.pipeline_mode<synchronous>, transform_indices = @transform_1, window_bounds = array<i64: 16, 32>}, {pipeline_mode = #tpu.pipeline_mode<synchronous>, transform_indices = @transform_2, window_bounds = array<i64: 1, 32>}, {pipeline_mode = #tpu.pipeline_mode<synchronous>, transform_indices = @transform_3, window_bounds = array<i64: 32, 128>}, {pipeline_mode = #tpu.pipeline_mode<synchronous>, transform_indices = @transform_4, window_bounds = array<i64: 1, 128>}, {transform_indices = @transform_5, window_bounds = array<i64: 8, 128>}]} {
    %c0 = arith.constant 0 : index
    %c0_0 = arith.constant 0 : index
    %0 = vector.load %arg1[%c0, %c0_0] : memref<8x16xbf16, #tpu.memory_space<vmem>>, vector<8x16xbf16>
    %c0_1 = arith.constant 0 : index
    %c0_2 = arith.constant 0 : index
    %1 = vector.load %arg2[%c0_1, %c0_2] : memref<16x32xbf16, #tpu.memory_space<vmem>>, vector<16x32xbf16>
    %cst = arith.constant dense<0.000000e+00> : vector<8x32xf32>
    %2 = tpu.matmul %0, %1, %cst {dimension_numbers = #tpu.dot_dimension_numbers<[1], [0], [0], [1], [0, 0, 1, 1], [], []>} : vector<8x16xbf16>, vector<16x32xbf16>, vector<8x32xf32> -> vector<8x32xf32>
    %c0_3 = arith.constant 0 : index
    %c0_4 = arith.constant 0 : index
    %3 = vector.load %arg3[%c0_3, %c0_4] : memref<1x32xf32, #tpu.memory_space<vmem>>, vector<1x32xf32>
    %4 = vector.broadcast %3 : vector<1x32xf32> to vector<8x32xf32>
    %5 = arith.addf %2, %4 : vector<8x32xf32>
    %cst_5 = arith.constant 0.000000e+00 : f32
    %6 = vector.broadcast %cst_5 : f32 to vector<8x32xf32>
    %7 = arith.maximumf %5, %6 : vector<8x32xf32>
    %8 = arith.truncf %7 : vector<8x32xf32> to vector<8x32xbf16>
    %c0_6 = arith.constant 0 : index
    %c0_7 = arith.constant 0 : index
    %9 = vector.load %arg4[%c0_6, %c0_7] : memref<32x128xbf16, #tpu.memory_space<vmem>>, vector<32x128xbf16>
    %cst_8 = arith.constant dense<0.000000e+00> : vector<8x128xf32>
    %10 = tpu.matmul %8, %9, %cst_8 {dimension_numbers = #tpu.dot_dimension_numbers<[1], [0], [0], [1], [0, 0, 1, 1], [], []>} : vector<8x32xbf16>, vector<32x128xbf16>, vector<8x128xf32> -> vector<8x128xf32>
    %c0_9 = arith.constant 0 : index
    %c0_10 = arith.constant 0 : index
    %11 = vector.load %arg5[%c0_9, %c0_10] : memref<1x128xf32, #tpu.memory_space<vmem>>, vector<1x128xf32>
    %12 = vector.broadcast %11 : vector<1x128xf32> to vector<8x128xf32>
    %13 = arith.addf %10, %12 : vector<8x128xf32>
    %c0_11 = arith.constant 0 : index
    %c0_12 = arith.constant 0 : index
    %14 = vector.load %arg6[%c0_11, %c0_12] : memref<8x128xf32, #tpu.memory_space<vmem>>, vector<8x128xf32>
    tpu.vector_store %arg6[%c0_11, %c0_12], %13 {strides = array<i32>} : memref<8x128xf32, #tpu.memory_space<vmem>>, vector<8x128xf32>,
    return
  }
  func.func @transform_0(%arg0: i32) -> (i32, i32) {
    %c0_i32 = arith.constant 0 : i32
    %c0_i32_0 = arith.constant 0 : i32
    return %arg0, %c0_i32 : i32, i32
  }
  func.func @transform_1(%arg0: i32) -> (i32, i32) {
    %c0_i32 = arith.constant 0 : i32
    %c0_i32_0 = arith.constant 0 : i32
    %c0_i32_1 = arith.constant 0 : i32
    return %c0_i32, %c0_i32_0 : i32, i32
  }
  func.func @transform_2(%arg0: i32) -> (i32, i32) {
    %c0_i32 = arith.constant 0 : i32
    %c0_i32_0 = arith.constant 0 : i32
    %c0_i32_1 = arith.constant 0 : i32
    return %c0_i32, %c0_i32_0 : i32, i32
  }
  func.func @transform_3(%arg0: i32) -> (i32, i32) {
    %c0_i32 = arith.constant 0 : i32
    %c0_i32_0 = arith.constant 0 : i32
    %c0_i32_1 = arith.constant 0 : i32
    return %c0_i32, %c0_i32_0 : i32, i32
  }
  func.func @transform_4(%arg0: i32) -> (i32, i32) {
    %c0_i32 = arith.constant 0 : i32
    %c0_i32_0 = arith.constant 0 : i32
    %c0_i32_1 = arith.constant 0 : i32
    return %c0_i32, %c0_i32_0 : i32, i32
  }
  func.func @transform_5(%arg0: i32) -> (i32, i32) {
    %c0_i32 = arith.constant 0 : i32
    %c0_i32_0 = arith.constant 0 : i32
    return %arg0, %c0_i32 : i32, i32
  }
}

</mosaic_0001>

<bundles_post_ra>
// kernel: tpu_custom_call.1
= control target key start
LH: loop header
LB: loop body
LE: loop exit
PB: predicated region body
PF: predicated region fallthrough
CT: control target
= control target key end

     0   :  { %10 = vsyncpa [#allocation3], 0  ;;  %s386_s0 = inlined_call_operand.hbm [shape: bf16[8,16], index: 0, kind: input, shape index: {}]   ;;  %s387_s1 = inlined_call_operand.hbm [shape: bf16[16,32], index: 1, kind: input, shape index: {}]   ;;  %s388_s2 = inlined_call_operand.vmem [shape: f32[1,32], index: 2, kind: input, shape index: {}]   ;;  %s389_s3 = inlined_call_operand.hbm [shape: bf16[32,128], index: 3, kind: input, shape index: {}]   ;;  %s390_s4 = inlined_call_operand.vmem [shape: f32[1,128], index: 4, kind: input, shape index: {}]   ;;  %s391_s5 = inlined_call_operand.hbm [shape: f32[8,128], index: 5, kind: output, shape index: {}]  }
   0x1   :  { %11 = vsyncpa [#allocation6], 0 }
   0x2   :  { %12 = vsyncpa [#allocation4], 0  ;;  %s330_s18 = smov [#allocation5]  }
   0x3   :  { %s28_s19 = sshll.u32 %s330_s18, 4  ;;  %s29_s19 = int_to_ptr.vmem [resolvable:$true] %s28_s19 }
   0x4   :  { %s252_s20 = scalar_lea.vmem %s29_s19, 128  ;;  %p257_p1 = scmp.lt.s32.totalorder %s29_s19, %s29_s19 }
   0x5   :  { %p253_p0 = scmp.ne.s32.totalorder %s29_s19, %s252_s20  ;;  %p258_p2 = scmp.lt.s32.totalorder %s252_s20, %s252_s20 }
   0x7   :  { %p259_p3 = por %p258_p2, %p257_p1 }
   0x9   :  { %p260_p4 = pnand %p259_p3, %p253_p0 }
   0xb   :  { %263 = shalt.err (!%p260_p4)
}
   0xc   :  { %s331_s21 = smov 64   ;;  %s332_s22 = smov 4  }
   0xd   :  { %34 = dma.hbm_to_vmem [thread:$0]  %s387_s1, 128, %s29_s19, [#allocation6], %s331_s21, %s331_s21, %s332_s22  }
   0xe   :  { %s333_s25 = smov [#allocation2]   ;;  %s334_s27 = smov [#allocation7]  }
   0xf   :  { %s19_s26 = sshll.u32 %s333_s25, 4  ;;  %s42_s28 = sshll.u32 %s334_s27, 4  ;;  %s20_s26 = int_to_ptr.vmem [resolvable:$true] %s19_s26  ;;  %s43_s28 = int_to_ptr.vmem [resolvable:$true] %s42_s28 }
  0x10   :  { %s272_s29 = scalar_lea.vmem %s20_s26, 64  ;;  %p277_p6 = scmp.lt.s32.totalorder %s20_s26, %s20_s26 }
  0x11   :  { %p273_p5 = scmp.ne.s32.totalorder %s20_s26, %s272_s29  ;;  %p278_p7 = scmp.lt.s32.totalorder %s272_s29, %s272_s29 }
  0x13   :  { %p279_p8 = por %p278_p7, %p277_p6 }
  0x15   :  { %p280_p9 = pnand %p279_p8, %p273_p5 }
  0x17   :  { %283 = shalt.err (!%p280_p9)
}
  0x18   :  { %22 = dma.hbm_to_vmem [thread:$0]  %s386_s0, 64, %s20_s26, [#allocation3]  }
  0x19   :  { %s292_s7 = scalar_lea.vmem %s43_s28, 256  ;;  %p297_p11 = scmp.lt.s32.totalorder %s43_s28, %s43_s28 }
  0x1a   :  { %p293_p10 = scmp.ne.s32.totalorder %s43_s28, %s292_s7  ;;  %p298_p12 = scmp.lt.s32.totalorder %s292_s7, %s292_s7 }
  0x1c   :  { %p299_p13 = por %p298_p12, %p297_p11 }
  0x1e   :  { %p300_p0 = pnand %p299_p13, %p293_p10 }
  0x20   :  { %303 = shalt.err (!%p300_p0)
}
  0x21   :  { %48 = dma.hbm_to_vmem [thread:$0]  %s389_s3, 256, %s43_s28, [#allocation6], %s331_s21, %s331_s21, %s332_s22  }
  0x22   :  { %324 = dma.done.wait [#allocation3], 64  }
  0x23   :  { %325 = vsyncadd [#allocation3], 4294967232 }
  0x24   :  { %326 = dma.done.wait [#allocation6], 384  }
  0x25   :  { %327 = vsyncadd [#allocation6], 4294966912  ;;  %v335_v0 = vmov 0.0   ;;  %vm336_vm0 = vmmov 0   ;;  %v241_v1 = vld [vmem:[#allocation5] sm:$0xff]   ;;  %vm77_vm1 = vcmask 130048  }
  0x26   :  { %219 = vmatprep.subr.bf16.mxu0 %v335_v0  ;;  %221 = vmatprep.mubr.msk.bf16.mxu0 %vm336_vm0, %v335_v0  ;;  %v61_v2 = vld [vmem:[#allocation2] sm:$0xf]  ;;  %v242_v3 = vld [vmem:[#allocation7 + $0x8] sm:$0xff]   ;;  %v243_v4 = vld [vmem:[#allocation7] sm:$0xff]   ;;  %vm146_vm2 = vcmask 261120   ;;  %s337_s11 = smov [#allocation8]  }
  0x27   :  { %225 = vmatprep.subr.bf16.mxu1 %v335_v0  ;;  %229 = vmatprep.mubr.msk.bf16.mxu1 %vm336_vm0, %v335_v0  ;;  %v207_v5 = vld [vmem:[%s388_s2] ss:$0 sm:$0xff]  ;;  %s197_s12 = sshll.u32 %s337_s11, 4  ;;  %s198_s12 = int_to_ptr.vmem [resolvable:$true] %s197_s12 }
  0x28   :  { %220 = vmatpush3.bf16.msra.mxu0 %v241_v1  ;;  %226 = vmatpush3.bf16.msra.mxu1 %v242_v3  ;;  %v210_v13 = vld [vmem:[%s390_s4] ss:$0 sm:$0xff]  ;;  %s304_s2 = scalar_lea.vmem %s198_s12, 128  ;;  %p309_p2 = scmp.lt.s32.totalorder %s198_s12, %s198_s12 }
  0x29   :  { %227 = vmatprep.subr.bf16.mxu1 %v335_v0  ;;  %p305_p1 = scmp.ne.s32.totalorder %s198_s12, %s304_s2  ;;  %p310_p3 = scmp.lt.s32.totalorder %s304_s2, %s304_s2 }
  0x2b   :  { %222 = vmatmul.mubr.msk.bf16.vlgmr.msra.gmra.mxu0 %vm77_vm1, %v61_v2  ;;  %p311_p4 = por %p310_p3, %p309_p2 }
  0x2c   :  { %228 = vmatpush3.bf16.msra.mxu1 %v243_v4 }
  0x2d   :  { %p312_p5 = pnand %p311_p4, %p305_p1 }
  0xeb   :  { %v115_v6 = vpop.f32.mrf.mxu0 }
  0xec   :  { %v116_v7 = vadd.f32 %v207_v5, %v115_v6 }
  0xed   :  { %v223_v8 = vpop.f32.mrf.mxu0 }
  0xee   :  { %v121_v9 = vmax.f32 %v116_v7, 0.0 }
  0xef   :  { %v118_v10 = vpop.f32.mrf.mxu0 }
  0xf0   :  { %v122_v11 = vpack.c.bf16 %v121_v9, %v121_v9 }
  0xf1   :  { %v224_v12 = vpop.f32.mrf.mxu0 }
  0xf2   :  { %230 = vmatmul.mubr.msk.bf16.vlgmr.msra.gmra.mxu1 %vm146_vm2, %v122_v11 }
 0x1b2   :  { %v184_v14 = vpop.f32.mrf.mxu1 }
 0x1b3   :  { %v185_v15 = vadd.f32 %v210_v13, %v184_v14 }
 0x1b4   :  { %v231_v16 = vpop.f32.mrf.mxu1 }
 0x1b5   :  { %190 = vst [vmem:[#allocation8] sm:$0xff] %v185_v15 }
 0x1b6   :  { %v187_v17 = vpop.f32.mrf.mxu1 }
 0x1b7   :  { %315 = shalt.err (!%p312_p5)
}
 0x1b8   :  { %200 = dma.vmem_to_hbm [thread:$0]  %s198_s12, 128, %s391_s5, [#allocation4]   ;;  %v232_v18 = vpop.f32.mrf.mxu1 }
 0x1b9   :  { %328 = dma.done.wait [#allocation4], 128  }
 0x1ba   :  { %329 = vsyncadd [#allocation4], 4294967168 }
 0x1bb   :  { %204 = vsyncpa [#allocation3], 1 }
 0x1bc   :  { %205 = vsyncpa [#allocation6], 1 }
 0x1bd   :  { %206 = vsyncpa [#allocation4], 1 }

</bundles_post_ra>
